<compile_context>
chip_gen: v7x
topology: tpu7x:2x2x1
jax: 0.10.0
libtpu: 0.0.40
codegen_flags: <defaults>
</compile_context>

<pallas_src>
import functools

import jax
import jax.numpy as jnp
from jax.experimental import pallas as pl
from jax.experimental.pallas import tpu as pltpu


_LANE = 128          # TPU lane width (last-dim alignment)
_MIN_STEPS = 8       # >= ~4 grid steps per TensorCore (v7x has 2 TCs/chip)
_MAX_TM = 1024       # cap on M-tile rows: deeper pipelining, bounded per-step DMA


def _round_up(x, m):
    return ((x + m - 1) // m) * m


def _vmem_budget_bytes():
    """Per-chip (pipeline-buffer budget, scoped VMEM limit handed to Mosaic)."""
    try:
        cap = int(pltpu.get_tpu_info().vmem_capacity_bytes)
    except Exception:                      # no TPU visible at trace time, etc.
        cap = 64 * 1024 * 1024             # v7x per-TensorCore capacity (smallest)
    # Scoped limit: keep >= 16 MiB and >= 25% of VMEM free for Mosaic's own
    # internal scratch.  v5e/v6e (128 MiB) -> 96 MiB; v7x (64 MiB) -> 48 MiB.
    limit = max(min(cap - 16 * 1024 * 1024, (cap * 3) // 4), 32 * 1024 * 1024)
    # Buffer budget: extra headroom under the limit for semaphores / spills.
    budget = max(limit - 8 * 1024 * 1024, 16 * 1024 * 1024)
    return budget, limit


def _patch_embed_kernel(x_ref, w_ref, b_ref, o_ref):
    # x_ref: (tm, Kp) patches    w_ref: (Kp, Ep) flattened conv weight
    # b_ref: (1, Ep) f32 bias    o_ref: (tm, Ep)
    acc = jnp.dot(x_ref[...], w_ref[...], preferred_element_type=jnp.float32)
    o_ref[...] = (acc + b_ref[...]).astype(o_ref.dtype)   # f32 epilogue on VPU


def _choose_tm(m, kp, ep, x_bytes, o_bytes, budget):
    """Largest M tile fitting the VMEM budget while keeping >=_MIN_STEPS steps."""
    sublane = 8 if x_bytes >= 4 else (16 if x_bytes == 2 else 32)
    m_al = _round_up(max(m, sublane), sublane)
    # Resident across the grid: weight + bias.  Constant index_map means they
    # are fetched once, but Pallas still allocates two buffers for each.
    # TODO(synk): pipeline_mode=pl.Buffered(1) on the weight/bias specs would
    # halve this resident footprint; kept off for lowering portability.
    fixed = 2 * kp * ep * x_bytes + 2 * ep * 4
    if fixed >= budget:
        # TODO(synk): add a K (contraction) grid axis + f32 accumulator scratch
        # for pathologically large patch / embed sizes.
        raise ValueError("flattened conv weight does not fit the VMEM budget; "
                         "K/E tiling fallback not implemented")
    # Per output row: double-buffered x tile + double-buffered out tile + the
    # (tm, Ep) f32 matmul accumulator and bias-add temp the kernel materializes.
    per_row = 2 * kp * x_bytes + 2 * ep * o_bytes + 2 * ep * 4
    tm = (budget - fixed) // per_row
    tm = min(tm, _MAX_TM, m_al)
    # Keep >= _MIN_STEPS grid steps (when M allows) so input DMA and output
    # writeback hide behind the MXU and both v7x TensorCores get >= 4 steps.
    tm = min(tm, _round_up(pl.cdiv(m_al, _MIN_STEPS), sublane))
    tm = max((tm // sublane) * sublane, sublane)
    return int(tm)


def patch_embedding_forward(im, weight, bias, patch_size, compute_dtype=None):
    """im: (B, C, H, W) NCHW.  weight: (E, C, p, p) (PyTorch conv layout).
    bias: (E,).  Returns (B, num_patches, E) == proj(im).flatten(2).transpose(1, 2).

    compute_dtype: optional MXU input dtype (jnp.bfloat16 recommended on
    v5e/v6e/v7x when inputs are f32); accumulation and the bias epilogue
    always stay in float32, and the output keeps the input dtype.
    """
    B, C, H, W = im.shape
    E = weight.shape[0]
    p = patch_size
    if H % p != 0 or W % p != 0:
        raise ValueError("image dimensions must be divisible by the patch size")
    gh, gw = H // p, W // p
    num_patches = gh * gw
    K = C * p * p
    M = B * num_patches

    out_dtype = im.dtype
    x_dtype = jnp.dtype(compute_dtype) if compute_dtype is not None else jnp.dtype(im.dtype)
    x_bytes = x_dtype.itemsize
    o_bytes = jnp.dtype(out_dtype).itemsize

    # Space-to-depth patch extraction, flattened in (c, kh, kw) order so it
    # lines up with the flattened OIHW conv weight.  Cast to the MXU compute
    # dtype first (halves any materialized transpose traffic for bf16), then
    # offer the producer chain to XLA for fusion into the Pallas custom call
    # (allow_input_fusion) to avoid an extra (M, K) HBM round trip.
    # TODO(synk): if XLA declines fusing this 6-D transpose, switch operand 0
    # to memory_space=pl.ANY and DMA (C, p, W) row strips, unpacking the patch
    # rows inside the kernel.
    x = im.astype(x_dtype) if x_dtype != im.dtype else im
    x = x.reshape(B, C, gh, p, gw, p)
    x = jnp.transpose(x, (0, 2, 4, 1, 3, 5)).reshape(M, K)

    w = weight.reshape(E, K).T.astype(x_dtype)        # (K, E)
    b = bias.reshape(1, E).astype(jnp.float32)        # f32 epilogue

    # Lane-align only K (contraction) and E (output) -> unmasked vld/vst and
    # full MXU tiles.  M stays ragged: grid = cdiv(M, tm) and Pallas masks the
    # last partial block, so there is no M-pad copy in and no [:M] slice out.
    Kp = _round_up(K, _LANE)
    Ep = _round_up(E, _LANE)
    if Kp != K:
        x = jnp.pad(x, ((0, 0), (0, Kp - K)))
    if (Kp, Ep) != (K, E):
        w = jnp.pad(w, ((0, Kp - K), (0, Ep - E)))
        b = jnp.pad(b, ((0, 0), (0, Ep - E)))

    budget, vmem_limit = _vmem_budget_bytes()
    tm = _choose_tm(M, Kp, Ep, x_bytes, o_bytes, budget)
    grid = (pl.cdiv(M, tm),)

    cost = pl.CostEstimate(
        flops=2 * M * Kp * Ep,
        transcendentals=0,
        bytes_accessed=(M * Kp * x_bytes + Kp * Ep * x_bytes
                        + Ep * 4 + M * Ep * o_bytes),
    )

    out = pl.pallas_call(
        _patch_embed_kernel,
        out_shape=jax.ShapeDtypeStruct((M, Ep), out_dtype),
        grid_spec=pltpu.PrefetchScalarGridSpec(
            num_scalar_prefetch=0,
            grid=grid,
            in_specs=[
                # Streamed M tiles of patches.
                pl.BlockSpec((tm, Kp), lambda i: (i, 0)),
                # Weight / bias: constant index_map -> fetched once, resident
                # across the whole grid.
                pl.BlockSpec((Kp, Ep), lambda i: (0, 0)),
                pl.BlockSpec((1, Ep), lambda i: (0, 0)),
            ],
            out_specs=pl.BlockSpec((tm, Ep), lambda i: (i, 0)),
        ),
        compiler_params=pltpu.CompilerParams(
            # M axis is embarrassingly parallel -> megacore sharding on v7x.
            dimension_semantics=("parallel",),
            vmem_limit_bytes=int(vmem_limit),
            # Let XLA fuse the patch-extraction cast/transpose/pad producing
            # operand 0 into this custom call (weight/bias excluded).
            allow_input_fusion=[True, False, False],
        ),
        cost_estimate=cost,
    )(x, w, b)

    if Ep != E:
        out = out[:, :E]
    return out.reshape(B, num_patches, E)


def reference_forward(im, weight, bias, patch_size):
    # Pure-JAX reference of the PyTorch module (conv2d stride=kernel=patch).
    y = jax.lax.conv_general_dilated(
        im, weight,
        window_strides=(patch_size, patch_size),
        padding="VALID",
        dimension_numbers=("NCHW", "OIHW", "NCHW"),
    ) + bias.reshape(1, -1, 1, 1)
    B, E, gh, gw = y.shape
    return jnp.transpose(y.reshape(B, E, gh * gw), (0, 2, 1))


if __name__ == "__main__":
    # Module config (small, divisibility respected).
    image_size = (16, 16)
    patch_size = 4
    embed_dim = 32
    channels = 4
    batch = 2

    key = jax.random.PRNGKey(0)
    k_im, k_w, k_b = jax.random.split(key, 3)

    im = jax.random.normal(k_im, (batch, channels, *image_size), dtype=jnp.float32)
    # Deterministic synthetic conv parameters (shapes per nn.Conv2d(C, E, p, p)).
    weight = jax.random.normal(
        k_w, (embed_dim, channels, patch_size, patch_size), dtype=jnp.float32) * 0.02
    bias = jax.random.normal(k_b, (embed_dim,), dtype=jnp.float32) * 0.02

    ref = reference_forward(im, weight, bias, patch_size)
    num_patches = (image_size[0] // patch_size) * (image_size[1] // patch_size)

    # f32 MXU inputs: tight correctness check.
    fwd = jax.jit(functools.partial(patch_embedding_forward, patch_size=patch_size))
    out = fwd(im, weight, bias)
    jax.block_until_ready(out)
    assert out.shape == (batch, num_patches, embed_dim)
    assert jnp.allclose(out, ref, atol=1e-4, rtol=1e-4)

    # bf16 MXU inputs (fast path on v5e/v6e/v7x), f32 accumulate + f32 epilogue.
    fwd_bf16 = jax.jit(functools.partial(
        patch_embedding_forward, patch_size=patch_size,
        compute_dtype=jnp.bfloat16))
    out_bf16 = fwd_bf16(im, weight, bias)
    jax.block_until_ready(out_bf16)
    assert out_bf16.shape == (batch, num_patches, embed_dim)
    assert jnp.allclose(out_bf16, ref, atol=2e-2, rtol=2e-2)

    print("KERNEL_OK")
</pallas_src>

<mosaic_0001>
module attributes {stable_mosaic.version = 11 : i64} {
  func.func @_patch_embed_kernel(%arg0: i32, %arg1: memref<8x128xf32, #tpu.memory_space<vmem>>, %arg2: memref<128x128xf32, #tpu.memory_space<vmem>>, %arg3: memref<1x128xf32, #tpu.memory_space<vmem>>, %arg4: memref<8x128xf32, #tpu.memory_space<vmem>>) attributes {dimension_semantics = [#tpu.dimension_semantics<parallel>], iteration_bounds = array<i64: 4>, scalar_prefetch = 0 : i64, scratch_operands = 0 : i64, tpu.core_type = #tpu.core_type<tc>, window_params = [{transform_indices = @transform_0, window_bounds = array<i64: 8, 128>}, {pipeline_mode = #tpu.pipeline_mode<synchronous>, transform_indices = @transform_1, window_bounds = array<i64: 128, 128>}, {pipeline_mode = #tpu.pipeline_mode<synchronous>, transform_indices = @transform_2, window_bounds = array<i64: 1, 128>}, {transform_indices = @transform_3, window_bounds = array<i64: 8, 128>}]} {
    %c0 = arith.constant 0 : index
    %c0_0 = arith.constant 0 : index
    %0 = vector.load %arg1[%c0, %c0_0] : memref<8x128xf32, #tpu.memory_space<vmem>>, vector<8x128xf32>
    %c0_1 = arith.constant 0 : index
    %c0_2 = arith.constant 0 : index
    %1 = vector.load %arg2[%c0_1, %c0_2] : memref<128x128xf32, #tpu.memory_space<vmem>>, vector<128x128xf32>
    %cst = arith.constant dense<0.000000e+00> : vector<8x128xf32>
    %2 = tpu.matmul %0, %1, %cst {dimension_numbers = #tpu.dot_dimension_numbers<[1], [0], [0], [1], [0, 0, 1, 1], [], []>} : vector<8x128xf32>, vector<128x128xf32>, vector<8x128xf32> -> vector<8x128xf32>
    %c0_3 = arith.constant 0 : index
    %c0_4 = arith.constant 0 : index
    %3 = vector.load %arg3[%c0_3, %c0_4] : memref<1x128xf32, #tpu.memory_space<vmem>>, vector<1x128xf32>
    %4 = vector.broadcast %3 : vector<1x128xf32> to vector<8x128xf32>
    %5 = arith.addf %2, %4 : vector<8x128xf32>
    %c0_5 = arith.constant 0 : index
    %c0_6 = arith.constant 0 : index
    %6 = vector.load %arg4[%c0_5, %c0_6] : memref<8x128xf32, #tpu.memory_space<vmem>>, vector<8x128xf32>
    tpu.vector_store %arg4[%c0_5, %c0_6], %5 {strides = array<i32>} : memref<8x128xf32, #tpu.memory_space<vmem>>, vector<8x128xf32>,
    return
  }
  func.func @transform_0(%arg0: i32) -> (i32, i32) {
    %c0_i32 = arith.constant 0 : i32
    %c0_i32_0 = arith.constant 0 : i32
    return %arg0, %c0_i32 : i32, i32
  }
  func.func @transform_1(%arg0: i32) -> (i32, i32) {
    %c0_i32 = arith.constant 0 : i32
    %c0_i32_0 = arith.constant 0 : i32
    %c0_i32_1 = arith.constant 0 : i32
    return %c0_i32, %c0_i32_0 : i32, i32
  }
  func.func @transform_2(%arg0: i32) -> (i32, i32) {
    %c0_i32 = arith.constant 0 : i32
    %c0_i32_0 = arith.constant 0 : i32
    %c0_i32_1 = arith.constant 0 : i32
    return %c0_i32, %c0_i32_0 : i32, i32
  }
  func.func @transform_3(%arg0: i32) -> (i32, i32) {
    %c0_i32 = arith.constant 0 : i32
    %c0_i32_0 = arith.constant 0 : i32
    return %arg0, %c0_i32 : i32, i32
  }
}

</mosaic_0001>

<bundles_post_ra>
// kernel: patch_embedding_forward.2
= control target key start
LH: loop header
LB: loop body
LE: loop exit
PB: predicated region body
PF: predicated region fallthrough
CT: control target
= control target key end

     0   :  { %s724_s0 = inlined_call_operand.vmem [shape: f32[128,128], index: 0, kind: input, shape index: {}]   ;;  %s725_s1 = inlined_call_operand.vmem [shape: f32[1,128], index: 1, kind: input, shape index: {}]   ;;  %s726_s2 = inlined_call_operand.vmem [shape: f32[32,64], index: 2, kind: input, shape index: {}]   ;;  %s727_s3 = inlined_call_operand.<no memory space> [shape: f32[], index: 3, kind: input, shape index: {}]   ;;  %s728_s4 = inlined_call_operand.hbm [shape: f32[32,128], index: 4, kind: output, shape index: {}]  }
   0x1   :  { %v9_v0 = vstv %s727_s3 }
   0x2   :  { %10 = vsyncpa [#allocation8], 0 }
   0x3   :  { %12 = vsyncpa [#allocation8 + $0x1], 0  ;;  %s569_s17 = smov 0   ;;  %s571_s18 = smov 0  }
   0x4   :  { %s573_s19 = smov 0   ;;  %s575_s20 = smov 0  }
   0x5 LB: > { %s590_s21 = sadd.s32 4294967295, %s535_s20   ;;  %s344_s22 = sadd.s32 4294967294, %s535_s20   ;;  %s535_s20 = sphi %s575_s20, %s734_s20   ;;  %s531_s19 = sphi %s573_s19, %s733_s19   ;;  %s527_s18 = sphi %s571_s18, %s732_s18   ;;  %s523_s17 = sphi %s569_s17, %s731_s17  }
   0x6   : > { %s594_s23 = sadd.s32 1, %s535_s20   ;;  %s93_s24 = sadd.s32 1, %s531_s19 }
   0x7   : > { %s90_s25 = ssub.s32 %s535_s20, %s594_s23  ;;  %p103_p0 = scmp.ne.s32.totalorder %s531_s19, %s527_s18 }
   0x8   : > { %p91_p1 = scmp.eq.s32.totalorder %s90_s25, 0  ;;  %p104_p2 = scmp.eq.s32.totalorder %s590_s21, 3 }
   0x9   : > { %p109_p3 = scmp.ne.s32.totalorder %s527_s18, %s523_s17  ;;  %p110_p4 = scmp.eq.s32.totalorder %s344_s22, 3 }
   0xa   : > { %s605_s26 = scalar_select %p91_p1, %s531_s19, %s93_s24  }
   0xb   : > { %p607_p5 = por %p104_p2, %p103_p0  ;;  %p611_p6 = por %p110_p4, %p109_p3 }
   0xc   : > { %p347_p7 = scmp.ge.s32.totalorder %s535_s20, 1  ;;  %p141_p8 = scmp.lt.s32.totalorder %s535_s20, 5 }
   0xe   : > { %p142_p9 = pnand %p347_p7, %p141_p8 }
   0xf   : > { %v177_v1 = vld [vmem:[%s724_s0] sm:$0xff] (!%p142_p9)  ;;  %v178_v2 = vld [vmem:[%s724_s0 + $0x8] sm:$0xff] (!%p142_p9)  ;;  %v179_v3 = vld [vmem:[%s724_s0 + $0x10] sm:$0xff] (!%p142_p9)  ;;  %v537_v4 = vmov (!%p142_p9), 0.0|0.0   ;;  %vm538_vm0 = vmmov (!%p142_p9), 0   ;;  %v539_v7 = vmov (!%p142_p9), 0.0   ;;  %v169_v23 = vlaneseq (!%p142_p9) }
  0x10   : > { %145 = sbr.rel (%p142_p9) target bundleno = 277 (0x115), region = 32  ;;  %407 = vmatprep.subr.bf16.mxu0 (!%p142_p9), %v537_v4  ;;  %v408_v5 = vpack.c.bf16 (!%p142_p9), %v178_v2, %v177_v1  ;;  %v180_v6 = vld [vmem:[%s724_s0 + $0x18] sm:$0xff] (!%p142_p9)  ;;  %404 = vmatprep.mubr.msk.f32.mxu0 (!%p142_p9), %vm538_vm0, %v539_v7  ;;  %v181_v9 = vld [vmem:[%s724_s0 + $0x20] sm:$0xff] (!%p142_p9)  ;;  %v182_v10 = vld [vmem:[%s724_s0 + $0x28] sm:$0xff] (!%p142_p9)  ;;  %p164_p10 = scmp.lt.s32.totalorder (!%p142_p9), %s590_s21, 3 }
  0x11   : > { %v411_v8 = vpack.c.bf16 (!%p142_p9), %v180_v6, %v179_v3  ;;  %v414_v11 = vpack.c.bf16 (!%p142_p9), %v182_v10, %v181_v9  ;;  %v183_v12 = vld [vmem:[%s724_s0 + $0x30] sm:$0xff] (!%p142_p9)  ;;  %v184_v13 = vld [vmem:[%s724_s0 + $0x38] sm:$0xff] (!%p142_p9)  ;;  %v185_v15 = vld [vmem:[%s724_s0 + $0x40] sm:$0xff] (!%p142_p9)  ;;  %v170_v27 = vand.u32 (!%p142_p9), 127, %v169_v23  ;;  %s161_s8 = sand.u32 (!%p142_p9), 1, %s527_s18   ;;  %s352_s12 = sshll.u32 (!%p142_p9), %s590_s21, 7 }
  0x12   : > { %409 = vmatpush3.bf16.msra.mxu0 (!%p142_p9), %v408_v5  ;;  %v417_v14 = vpack.c.bf16 (!%p142_p9), %v184_v13, %v183_v12  ;;  %v186_v16 = vld [vmem:[%s724_s0 + $0x48] sm:$0xff] (!%p142_p9)  ;;  %v187_v18 = vld [vmem:[%s724_s0 + $0x50] sm:$0xff] (!%p142_p9)  ;;  %v188_v19 = vld [vmem:[%s724_s0 + $0x58] sm:$0xff] (!%p142_p9)  ;;  %s348_s9 = sshll.u32 (!%p142_p9), %s161_s8, 3  ;;  %s682_s22 = scalar_lea.hbm (!%p142_p9), %s728_s4, %s352_s12 }
  0x13   : > { %410 = vmatprep.subr.bf16.mxu0 (!%p142_p9), %v537_v4  ;;  %v420_v17 = vpack.c.bf16 (!%p142_p9), %v186_v16, %v185_v15  ;;  %v423_v20 = vpack.c.bf16 (!%p142_p9), %v188_v19, %v187_v18  ;;  %v189_v21 = vld [vmem:[%s724_s0 + $0x60] sm:$0xff] (!%p142_p9)  ;;  %v190_v22 = vld [vmem:[%s724_s0 + $0x68] sm:$0xff] (!%p142_p9)  ;;  %v191_v25 = vld [vmem:[%s724_s0 + $0x70] sm:$0xff] (!%p142_p9)  ;;  %vm172_vm1 = vcmp.lt.s32.totalorder (!%p142_p9), %v170_v27, 64  ;;  %s163_s13 = scalar_lea.vmem (!%p142_p9), [#allocation7], %s348_s9  ;;  %s272_s24 = scalar_lea.sflag (!%p142_p9), [#allocation8], %s161_s8 }
  0x14   : > { %v426_v24 = vpack.c.bf16 (!%p142_p9), %v190_v22, %v189_v21  ;;  %v192_v26 = vld [vmem:[%s724_s0 + $0x78] sm:$0xff] (!%p142_p9)  ;;  %v350_v31 = vld [vmem:[%s725_s1] ss:$0 sm:$0xff] (!%p142_p9)  ;;  %s285_s14 = sshll.u32 (!%p142_p9), %s163_s13, 4  ;;  %s684_s14 = int_to_ptr.vmem [resolvable:$true] %s285_s14 }
  0x15   : > { %v429_v28 = vpack.c.bf16 (!%p142_p9), %v192_v26, %v191_v25  ;;  %s473_s25 = scalar_lea.vmem (!%p142_p9), %s684_s14, 128 }
  0x16   : > { %412 = vmatpush3.bf16.msra.mxu0 (!%p142_p9), %v411_v8  ;;  %p474_p11 = scmp.ne.s32.totalorder (!%p142_p9), %s684_s14, %s473_s25 }
  0x17   : > { %413 = vmatprep.subr.bf16.mxu0 %v537_v4  ;;  %s165_s10 = scalar_select %p164_p10, %s590_s21, 3 }
  0x18   : > { %p475_p12 = pnand %p474_p11, %p607_p5  ;;  %s540_s21 = smov [#allocation7]  }
  0x19   : > { %s349_s15 = sshll.u32 %s165_s10, 3  ;;  %s477_s29 = sshll.u32 %s540_s21, 4  ;;  %s478_s29 = int_to_ptr.vmem [resolvable:$false] %s477_s29 }
  0x1a   : > { %415 = vmatpush3.bf16.msra.mxu0 %v414_v11  ;;  %s167_s5 = scalar_lea.vmem %s726_s2, %s349_s15  ;;  %p476_p13 = pneg %p475_p12 }
  0x1b   : > { %416 = vmatprep.subr.bf16.mxu0 %v537_v4  ;;  %v168_v29 = vld [vmem:[%s167_s5] sm:$0xff]  ;;  %s479_s30 = scalar_lea.vmem %s478_s29, 256  ;;  %p480_p0 = scmp.lt.s32.totalorder %s684_s14, %s478_s29 }
  0x1c   : > { %v173_v30 = vsel %vm172_vm1, %v168_v29, %v9_v0  ;;  %p481_p1 = scmp.lt.s32.totalorder %s479_s30, %s473_s25 }
  0x1e   : > { %418 = vmatpush3.bf16.msra.mxu0 %v417_v14  ;;  %p482_p2 = por %p481_p1, %p480_p0 }
  0x1f   : > { %419 = vmatprep.subr.bf16.mxu0 %v537_v4 }
  0x20   : > { %p483_p3 = pnand %p482_p2, %p476_p13 }
  0x22   : > { %421 = vmatpush3.bf16.msra.mxu0 %v420_v17 }
  0x23   : > { %422 = vmatprep.subr.bf16.mxu0 %v537_v4 }
  0x26   : > { %424 = vmatpush3.bf16.msra.mxu0 %v423_v20 }
  0x27   : > { %425 = vmatprep.subr.bf16.mxu0 %v537_v4 }
  0x2a   : > { %427 = vmatpush3.bf16.msra.mxu0 %v426_v24 }
  0x2b   : > { %428 = vmatprep.subr.bf16.mxu0 %v537_v4 }
  0x2e   : > { %430 = vmatpush3.bf16.msra.mxu0 %v429_v28 }
  0x31   : > { %405 = vmatmul.mubr.f32.vlgmr.msra.gmra.mrb[0].mxu0 %v173_v30 }
 0x104   : > { %v266_v32 = vpop.f32.mrb[0].mxu0 }
 0x105   : > { %v267_v33 = vadd.f32 %v350_v31, %v266_v32  ;;  %v406_v34 = vpop.f32.mrb[1].mxu0 }
 0x107   : > { %270 = vst [vmem:[%s163_s13] sm:$0xff] %v267_v33 }
 0x108   : > { %486 = shalt.err (!%p483_p3)
}
 0x109   : > { %s487_s5 = scalar_lea.hbm %s682_s22, 128  ;;  %s491_s8 = scalar_lea.hbm %s728_s4, 512 }
 0x10a   : > { %p488_p4 = scmp.ne.s32.totalorder %s682_s22, %s487_s5  ;;  %p492_p9 = scmp.lt.u32.totalorder %s682_s22, %s728_s4 }
 0x10b   : > { %p493_p10 = scmp.lt.u32.totalorder %s491_s8, %s487_s5  ;;  %p495_p12 = scmp.lt.u32.totalorder %s487_s5, %s682_s22 }
 0x10c   : > { %p489_p7 = pnand %p488_p4, %p607_p5 }
 0x10d   : > { %p494_p11 = por %p493_p10, %p492_p9 }
 0x10e   : > { %p490_p8 = pneg %p489_p7 }
 0x10f   : > { %p496_p13 = por %p495_p12, %p494_p11 }
 0x111   : > { %p497_p0 = pnand %p496_p13, %p490_p8 }
 0x113   : > { %500 = shalt.err (!%p497_p0)
}
 0x114   : > { %431 = dma.vmem_to_hbm [thread:$0]  (%p607_p5), %s684_s14, 128, %s682_s22, %s272_s24  }
 0x115 PF: > { %p437_p1 = scmp.ge.s32.totalorder %s535_s20, 2  ;;  %s297_s11 = sand.u32 1, %s523_s17  }
 0x116   : > { %s298_s12 = scalar_lea.sflag [#allocation8], %s297_s11 }
 0x117   : > { %p434_p2 = pnand %p437_p1, %p611_p6 }
 0x119   : > { %518 = dma.done.wait (!%p434_p2), %s298_s12, 128  }
 0x11a   : > { %520 = vsyncadd (!%p434_p2), %s298_s12, 4294967168  ;;  %p15_p3 = scmp.ge.s32.totalorder %s594_s23, 6   ;;  %s731_s17 = smov %s527_s18 }
 0x11b   : > { %s732_s18 = smov %s531_s19  ;;  %s733_s19 = smov %s605_s26 }
 0x11c   : > { %s734_s20 = smov %s594_s23  ;;  %17 = sbr.rel (!%p15_p3) target bundleno = 5 (0x5), region = 67 }
 0x123   :  { %303 = vsyncpa [#allocation8], 1 }
 0x124   :  { %305 = vsyncpa [#allocation8 + $0x1], 1 }

</bundles_post_ra>
